<compile_context>
chip_gen: v7x
topology: tpu7x:2x2x1
jax: 0.10.0
libtpu: 0.0.40
codegen_flags: <defaults>
</compile_context>

<pallas_src>
import jax
import jax.numpy as jnp
from jax.experimental import pallas as pl
from jax.experimental.pallas import tpu as pltpu

NUM_CLASSES = 2
C_PAD = 128            # lane-dense padded class dimension
_STATIC_UNROLL_L = 64  # fully unroll the per-token loop for short sequences


def dan_kernel(ids_ref, table_ref, w1_ref, b1_ref, w2_ref, b2_ref,
               w3_ref, b3_ref, out_ref):
    TB, L = ids_ref.shape
    V, D = table_ref.shape

    # ---- fused embedding gather + mean over the sequence axis -------------
    # counts[b, v] = #{l : ids[b, l] == v}; live data is only (TB, V) f32.
    vocab_iota = jax.lax.broadcasted_iota(jnp.int32, (TB, V), 1)
    counts0 = jnp.zeros((TB, V), jnp.float32)

    if L <= _STATIC_UNROLL_L:
        ids = ids_ref[...]                                        # (TB, L) i32
        counts = counts0
        for l in range(L):                                        # static unroll
            tok = jax.lax.slice_in_dim(ids, l, l + 1, axis=1)     # (TB, 1)
            counts = counts + (tok == vocab_iota).astype(jnp.float32)
    else:
        def body(l, c):
            tok = ids_ref[:, pl.ds(l, 1)]                         # (TB, 1)
            return c + (tok == vocab_iota).astype(jnp.float32)
        counts = jax.lax.fori_loop(0, L, body, counts0)

    # sum_l E[ids[b, l]] = counts @ E  -> single MXU matmul, f32 accumulation.
    # counts are exact small integers (<= L): bf16 operands are exact for
    # L <= 256, otherwise keep the contraction in f32.
    cdtype = jnp.bfloat16 if L <= 256 else jnp.float32
    summed = jnp.dot(counts.astype(cdtype), table_ref[...].astype(cdtype),
                     preferred_element_type=jnp.float32)          # (TB, D)
    x = summed * (1.0 / L)                       # fold the mean's 1/L scale in

    # ---- MLP: fc1 -> ReLU -> (dropout: identity) -> fc2 -> ReLU -> fc3 ----
    # bf16 only at the MXU operand boundary; f32 accumulate / bias / ReLU.
    h1 = jnp.dot(x.astype(jnp.bfloat16), w1_ref[...],
                 preferred_element_type=jnp.float32) + b1_ref[...]
    h1 = jnp.maximum(h1, 0.0)
    # TODO(synk): nn.Dropout(0.6) is identity in eval mode.
    h2 = jnp.dot(h1.astype(jnp.bfloat16), w2_ref[...],
                 preferred_element_type=jnp.float32) + b2_ref[...]
    h2 = jnp.maximum(h2, 0.0)
    logits = jnp.dot(h2.astype(jnp.bfloat16), w3_ref[...],
                     preferred_element_type=jnp.float32) + b3_ref[...]
    # logits: (TB, C_PAD) -- lanes >= NUM_CLASSES are padding.

    # ---- masked (2-class) log-softmax over the padded lane dimension ------
    lane = jax.lax.broadcasted_iota(jnp.int32, logits.shape, 1)
    valid = lane < NUM_CLASSES
    masked = jnp.where(valid, logits, -1e30)
    m = jnp.max(masked, axis=-1, keepdims=True)
    shifted = masked - m
    sumexp = jnp.sum(jnp.exp(shifted), axis=-1, keepdims=True)  # pads exp to 0
    logp = shifted - jnp.log(sumexp)
    out_ref[...] = jnp.where(valid, logp, 0.0).astype(out_ref.dtype)


def _round_up(x, m):
    return ((x + m - 1) // m) * m


def _choose_batch_tile(batch):
    """Batch tile: multiple of 8, <= 512, and >= 2 grid steps whenever the
    padded batch allows it (so v7x's second TensorCore gets work)."""
    b8 = _round_up(max(batch, 1), 8)
    if b8 <= 8:
        return 8
    return min(512, _round_up(pl.cdiv(b8, 2), 8))


def _build_dan_call(B_pad, TB, L, V, D, H, single_buffer_consts):
    grid = (B_pad // TB,)

    def const_spec(shape):
        idx = lambda i, _s=shape: tuple(0 for _ in _s)
        if single_buffer_consts:
            # Constant index_map -> single buffer is enough; halves VMEM use.
            return pl.BlockSpec(shape, idx, pipeline_mode=pl.Buffered(1))
        return pl.BlockSpec(shape, idx)

    # Explicit scoped-VMEM budget: per-step tiles (double-buffered) + constants.
    tile_bytes = 2 * (TB * L * 4 + TB * C_PAD * 4)
    const_bytes = (V * D + D * H + H * H + H * C_PAD) * 2 + (2 * H + C_PAD) * 4
    const_bytes *= 1 if single_buffer_consts else 2
    vmem_limit = int(min(48 * 1024 * 1024,
                         max(16 * 1024 * 1024, 2 * (tile_bytes + const_bytes))))

    return pl.pallas_call(
        dan_kernel,
        out_shape=jax.ShapeDtypeStruct((B_pad, C_PAD), jnp.float32),
        grid_spec=pltpu.PrefetchScalarGridSpec(
            num_scalar_prefetch=0,
            grid=grid,
            in_specs=[
                pl.BlockSpec((TB, L), lambda i: (i, 0)),   # token ids (per tile)
                const_spec((V, D)),                        # embedding table bf16
                const_spec((D, H)),                        # w1 bf16
                const_spec((1, H)),                        # b1 f32
                const_spec((H, H)),                        # w2 bf16
                const_spec((1, H)),                        # b2 f32
                const_spec((H, C_PAD)),                    # w3 lane-padded bf16
                const_spec((1, C_PAD)),                    # b3 lane-padded f32
            ],
            out_specs=pl.BlockSpec((TB, C_PAD), lambda i: (i, 0)),
        ),
        compiler_params=pltpu.CompilerParams(
            dimension_semantics=("parallel",),
            vmem_limit_bytes=vmem_limit,
        ),
    )


def dan_forward(token_ids, params):
    """DAN forward pass (eval mode). token_ids: (B, L) int -> (B, 2) log-probs."""
    table = params["embedding"]                      # (V, D) bf16
    w1, b1 = params["w1"], params["b1"]              # (D, H) bf16, (1, H) f32
    w2, b2 = params["w2"], params["b2"]              # (H, H) bf16, (1, H) f32
    w3p, b3p = params["w3_pad"], params["b3_pad"]    # (H, 128) bf16, (1, 128) f32

    B, L = token_ids.shape
    V, D = table.shape
    H = w1.shape[1]

    TB = _choose_batch_tile(B)
    B_pad = _round_up(B, TB)
    ids = token_ids.astype(jnp.int32)
    if B_pad != B:
        ids = jnp.pad(ids, ((0, B_pad - B), (0, 0)))

    args = (ids, table, w1, b1, w2, b2, w3p, b3p)
    try:
        out = _build_dan_call(B_pad, TB, L, V, D, H, True)(*args)
    except Exception:
        # pl.Buffered(1) single-buffering unsupported on this jax/libtpu:
        # fall back to default (double-buffered) constants.
        out = _build_dan_call(B_pad, TB, L, V, D, H, False)(*args)

    return out[:B, :NUM_CLASSES]


def init_params(key, vocab_size, embedding_dim, hidden_size):
    """Parameter init matching DAN.__init__ shapes.  One-time kernel prep
    (bf16 weight casts + lane-padding of fc3 to 128) is hoisted here so the
    per-call wrapper does no extra XLA work."""
    ks = jax.random.split(key, 7)

    def linear_init(kw, kb, fan_in, fan_out):
        bound = 1.0 / jnp.sqrt(float(fan_in))
        w = jax.random.uniform(kw, (fan_in, fan_out), jnp.float32, -bound, bound)
        b = jax.random.uniform(kb, (1, fan_out), jnp.float32, -bound, bound)
        return w, b

    embedding = jax.random.normal(ks[0], (vocab_size, embedding_dim), jnp.float32)
    w1, b1 = linear_init(ks[1], ks[2], embedding_dim, hidden_size)
    w2, b2 = linear_init(ks[3], ks[4], hidden_size, hidden_size)
    w3, b3 = linear_init(ks[5], ks[6], hidden_size, NUM_CLASSES)

    w3_pad = jnp.zeros((hidden_size, C_PAD), jnp.bfloat16)
    w3_pad = w3_pad.at[:, :NUM_CLASSES].set(w3.astype(jnp.bfloat16))
    b3_pad = jnp.zeros((1, C_PAD), jnp.float32).at[:, :NUM_CLASSES].set(b3)

    return {
        "embedding": embedding.astype(jnp.bfloat16),
        "w1": w1.astype(jnp.bfloat16), "b1": b1,
        "w2": w2.astype(jnp.bfloat16), "b2": b2,
        "w3_pad": w3_pad, "b3_pad": b3_pad,
    }


def dan_reference(token_ids, params):
    """Pure-JAX f32 reference of the same forward pass (eval mode)."""
    emb = jnp.take(params["embedding"].astype(jnp.float32),
                   token_ids.astype(jnp.int32), axis=0)          # (B, L, D)
    x = jnp.mean(emb, axis=1)
    w1 = params["w1"].astype(jnp.float32)
    w2 = params["w2"].astype(jnp.float32)
    w3 = params["w3_pad"][:, :NUM_CLASSES].astype(jnp.float32)
    b3 = params["b3_pad"][:, :NUM_CLASSES]
    h1 = jax.nn.relu(x @ w1 + params["b1"])
    h2 = jax.nn.relu(h1 @ w2 + params["b2"])
    logits = h2 @ w3 + b3
    return jax.nn.log_softmax(logits, axis=-1)


if __name__ == "__main__":
    # Small shapes consistent with the module: batch=2, seq=8, vocab=64,
    # embedding_dim=32, hidden_size=32.
    B, L = 2, 8
    VOCAB, EMB_DIM, HIDDEN = 64, 32, 32

    key = jax.random.PRNGKey(0)
    k_params, k_tokens = jax.random.split(key)

    params = init_params(k_params, VOCAB, EMB_DIM, HIDDEN)
    token_ids = jax.random.randint(k_tokens, (B, L), 0, VOCAB, dtype=jnp.int32)

    out = jax.block_until_ready(dan_forward(token_ids, params))

    # Sanity: shape + log-softmax rows sum to ~1 in probability space.
    assert out.shape == (B, NUM_CLASSES)
    row_sums = jnp.sum(jnp.exp(out), axis=-1)
    assert jnp.allclose(row_sums, jnp.ones_like(row_sums), atol=1e-3)

    # Cross-check against the pure-JAX reference (same bf16 params, f32 math).
    ref = dan_reference(token_ids, params)
    assert jnp.allclose(out, ref, atol=2e-2, rtol=2e-2), (out, ref)

    print("KERNEL_OK")
</pallas_src>

<mosaic_0001>
module attributes {stable_mosaic.version = 11 : i64} {
  func.func @dan_kernel(%arg0: i32, %arg1: memref<8x8xi32, #tpu.memory_space<vmem>>, %arg2: memref<64x32xbf16, #tpu.memory_space<vmem>>, %arg3: memref<32x32xbf16, #tpu.memory_space<vmem>>, %arg4: memref<1x32xf32, #tpu.memory_space<vmem>>, %arg5: memref<32x32xbf16, #tpu.memory_space<vmem>>, %arg6: memref<1x32xf32, #tpu.memory_space<vmem>>, %arg7: memref<32x128xbf16, #tpu.memory_space<vmem>>, %arg8: memref<1x128xf32, #tpu.memory_space<vmem>>, %arg9: memref<8x128xf32, #tpu.memory_space<vmem>>) attributes {dimension_semantics = [#tpu.dimension_semantics<parallel>], iteration_bounds = array<i64: 1>, scalar_prefetch = 0 : i64, scratch_operands = 0 : i64, tpu.core_type = #tpu.core_type<tc>, window_params = [{transform_indices = @transform_0, window_bounds = array<i64: 8, 8>}, {pipeline_mode = #tpu.pipeline_mode<synchronous>, transform_indices = @transform_1, window_bounds = array<i64: 64, 32>}, {pipeline_mode = #tpu.pipeline_mode<synchronous>, transform_indices = @transform_2, window_bounds = array<i64: 32, 32>}, {pipeline_mode = #tpu.pipeline_mode<synchronous>, transform_indices = @transform_3, window_bounds = array<i64: 1, 32>}, {pipeline_mode = #tpu.pipeline_mode<synchronous>, transform_indices = @transform_4, window_bounds = array<i64: 32, 32>}, {pipeline_mode = #tpu.pipeline_mode<synchronous>, transform_indices = @transform_5, window_bounds = array<i64: 1, 32>}, {pipeline_mode = #tpu.pipeline_mode<synchronous>, transform_indices = @transform_6, window_bounds = array<i64: 32, 128>}, {pipeline_mode = #tpu.pipeline_mode<synchronous>, transform_indices = @transform_7, window_bounds = array<i64: 1, 128>}, {transform_indices = @transform_8, window_bounds = array<i64: 8, 128>}]} {
    %0 = tpu.iota {dimensions = array<i32: 1>} : vector<8x64xi32>
    %cst = arith.constant 0.000000e+00 : f32
    %1 = vector.broadcast %cst : f32 to vector<8x64xf32>
    %c0 = arith.constant 0 : index
    %c0_0 = arith.constant 0 : index
    %2 = vector.load %arg1[%c0, %c0_0] : memref<8x8xi32, #tpu.memory_space<vmem>>, vector<8x8xi32>
    %3 = vector.extract_strided_slice %2 {offsets = [0, 0], sizes = [8, 1], strides = [1, 1]} : vector<8x8xi32> to vector<8x1xi32>
    %4 = vector.broadcast %3 : vector<8x1xi32> to vector<8x64xi32>
    %5 = arith.cmpi eq, %4, %0 : vector<8x64xi32>
    %6 = arith.extui %5 : vector<8x64xi1> to vector<8x64xi32>
    %7 = arith.sitofp %6 : vector<8x64xi32> to vector<8x64xf32>
    %8 = arith.addf %1, %7 : vector<8x64xf32>
    %9 = vector.extract_strided_slice %2 {offsets = [0, 1], sizes = [8, 1], strides = [1, 1]} : vector<8x8xi32> to vector<8x1xi32>
    %10 = vector.broadcast %9 : vector<8x1xi32> to vector<8x64xi32>
    %11 = arith.cmpi eq, %10, %0 : vector<8x64xi32>
    %12 = arith.extui %11 : vector<8x64xi1> to vector<8x64xi32>
    %13 = arith.sitofp %12 : vector<8x64xi32> to vector<8x64xf32>
    %14 = arith.addf %8, %13 : vector<8x64xf32>
    %15 = vector.extract_strided_slice %2 {offsets = [0, 2], sizes = [8, 1], strides = [1, 1]} : vector<8x8xi32> to vector<8x1xi32>
    %16 = vector.broadcast %15 : vector<8x1xi32> to vector<8x64xi32>
    %17 = arith.cmpi eq, %16, %0 : vector<8x64xi32>
    %18 = arith.extui %17 : vector<8x64xi1> to vector<8x64xi32>
    %19 = arith.sitofp %18 : vector<8x64xi32> to vector<8x64xf32>
    %20 = arith.addf %14, %19 : vector<8x64xf32>
    %21 = vector.extract_strided_slice %2 {offsets = [0, 3], sizes = [8, 1], strides = [1, 1]} : vector<8x8xi32> to vector<8x1xi32>
    %22 = vector.broadcast %21 : vector<8x1xi32> to vector<8x64xi32>
    %23 = arith.cmpi eq, %22, %0 : vector<8x64xi32>
    %24 = arith.extui %23 : vector<8x64xi1> to vector<8x64xi32>
    %25 = arith.sitofp %24 : vector<8x64xi32> to vector<8x64xf32>
    %26 = arith.addf %20, %25 : vector<8x64xf32>
    %27 = vector.extract_strided_slice %2 {offsets = [0, 4], sizes = [8, 1], strides = [1, 1]} : vector<8x8xi32> to vector<8x1xi32>
    %28 = vector.broadcast %27 : vector<8x1xi32> to vector<8x64xi32>
    %29 = arith.cmpi eq, %28, %0 : vector<8x64xi32>
    %30 = arith.extui %29 : vector<8x64xi1> to vector<8x64xi32>
    %31 = arith.sitofp %30 : vector<8x64xi32> to vector<8x64xf32>
    %32 = arith.addf %26, %31 : vector<8x64xf32>
    %33 = vector.extract_strided_slice %2 {offsets = [0, 5], sizes = [8, 1], strides = [1, 1]} : vector<8x8xi32> to vector<8x1xi32>
    %34 = vector.broadcast %33 : vector<8x1xi32> to vector<8x64xi32>
    %35 = arith.cmpi eq, %34, %0 : vector<8x64xi32>
    %36 = arith.extui %35 : vector<8x64xi1> to vector<8x64xi32>
    %37 = arith.sitofp %36 : vector<8x64xi32> to vector<8x64xf32>
    %38 = arith.addf %32, %37 : vector<8x64xf32>
    %39 = vector.extract_strided_slice %2 {offsets = [0, 6], sizes = [8, 1], strides = [1, 1]} : vector<8x8xi32> to vector<8x1xi32>
    %40 = vector.broadcast %39 : vector<8x1xi32> to vector<8x64xi32>
    %41 = arith.cmpi eq, %40, %0 : vector<8x64xi32>
    %42 = arith.extui %41 : vector<8x64xi1> to vector<8x64xi32>
    %43 = arith.sitofp %42 : vector<8x64xi32> to vector<8x64xf32>
    %44 = arith.addf %38, %43 : vector<8x64xf32>
    %45 = vector.extract_strided_slice %2 {offsets = [0, 7], sizes = [8, 1], strides = [1, 1]} : vector<8x8xi32> to vector<8x1xi32>
    %46 = vector.broadcast %45 : vector<8x1xi32> to vector<8x64xi32>
    %47 = arith.cmpi eq, %46, %0 : vector<8x64xi32>
    %48 = arith.extui %47 : vector<8x64xi1> to vector<8x64xi32>
    %49 = arith.sitofp %48 : vector<8x64xi32> to vector<8x64xf32>
    %50 = arith.addf %44, %49 : vector<8x64xf32>
    %51 = arith.truncf %50 : vector<8x64xf32> to vector<8x64xbf16>
    %c0_1 = arith.constant 0 : index
    %c0_2 = arith.constant 0 : index
    %52 = vector.load %arg2[%c0_1, %c0_2] : memref<64x32xbf16, #tpu.memory_space<vmem>>, vector<64x32xbf16>
    %cst_3 = arith.constant dense<0.000000e+00> : vector<8x32xf32>
    %53 = tpu.matmul %51, %52, %cst_3 {dimension_numbers = #tpu.dot_dimension_numbers<[1], [0], [0], [1], [0, 0, 1, 1], [], []>} : vector<8x64xbf16>, vector<64x32xbf16>, vector<8x32xf32> -> vector<8x32xf32>
    %cst_4 = arith.constant 1.250000e-01 : f32
    %54 = vector.broadcast %cst_4 : f32 to vector<8x32xf32>
    %55 = arith.mulf %53, %54 : vector<8x32xf32>
    %56 = arith.truncf %55 : vector<8x32xf32> to vector<8x32xbf16>
    %c0_5 = arith.constant 0 : index
    %c0_6 = arith.constant 0 : index
    %57 = vector.load %arg3[%c0_5, %c0_6] : memref<32x32xbf16, #tpu.memory_space<vmem>>, vector<32x32xbf16>
    %cst_7 = arith.constant dense<0.000000e+00> : vector<8x32xf32>
    %58 = tpu.matmul %56, %57, %cst_7 {dimension_numbers = #tpu.dot_dimension_numbers<[1], [0], [0], [1], [0, 0, 1, 1], [], []>} : vector<8x32xbf16>, vector<32x32xbf16>, vector<8x32xf32> -> vector<8x32xf32>
    %c0_8 = arith.constant 0 : index
    %c0_9 = arith.constant 0 : index
    %59 = vector.load %arg4[%c0_8, %c0_9] : memref<1x32xf32, #tpu.memory_space<vmem>>, vector<1x32xf32>
    %60 = vector.broadcast %59 : vector<1x32xf32> to vector<8x32xf32>
    %61 = arith.addf %58, %60 : vector<8x32xf32>
    %cst_10 = arith.constant 0.000000e+00 : f32
    %62 = vector.broadcast %cst_10 : f32 to vector<8x32xf32>
    %63 = arith.maximumf %61, %62 : vector<8x32xf32>
    %64 = arith.truncf %63 : vector<8x32xf32> to vector<8x32xbf16>
    %c0_11 = arith.constant 0 : index
    %c0_12 = arith.constant 0 : index
    %65 = vector.load %arg5[%c0_11, %c0_12] : memref<32x32xbf16, #tpu.memory_space<vmem>>, vector<32x32xbf16>
    %cst_13 = arith.constant dense<0.000000e+00> : vector<8x32xf32>
    %66 = tpu.matmul %64, %65, %cst_13 {dimension_numbers = #tpu.dot_dimension_numbers<[1], [0], [0], [1], [0, 0, 1, 1], [], []>} : vector<8x32xbf16>, vector<32x32xbf16>, vector<8x32xf32> -> vector<8x32xf32>
    %c0_14 = arith.constant 0 : index
    %c0_15 = arith.constant 0 : index
    %67 = vector.load %arg6[%c0_14, %c0_15] : memref<1x32xf32, #tpu.memory_space<vmem>>, vector<1x32xf32>
    %68 = vector.broadcast %67 : vector<1x32xf32> to vector<8x32xf32>
    %69 = arith.addf %66, %68 : vector<8x32xf32>
    %cst_16 = arith.constant 0.000000e+00 : f32
    %70 = vector.broadcast %cst_16 : f32 to vector<8x32xf32>
    %71 = arith.maximumf %69, %70 : vector<8x32xf32>
    %72 = arith.truncf %71 : vector<8x32xf32> to vector<8x32xbf16>
    %c0_17 = arith.constant 0 : index
    %c0_18 = arith.constant 0 : index
    %73 = vector.load %arg7[%c0_17, %c0_18] : memref<32x128xbf16, #tpu.memory_space<vmem>>, vector<32x128xbf16>
    %cst_19 = arith.constant dense<0.000000e+00> : vector<8x128xf32>
    %74 = tpu.matmul %72, %73, %cst_19 {dimension_numbers = #tpu.dot_dimension_numbers<[1], [0], [0], [1], [0, 0, 1, 1], [], []>} : vector<8x32xbf16>, vector<32x128xbf16>, vector<8x128xf32> -> vector<8x128xf32>
    %c0_20 = arith.constant 0 : index
    %c0_21 = arith.constant 0 : index
    %75 = vector.load %arg8[%c0_20, %c0_21] : memref<1x128xf32, #tpu.memory_space<vmem>>, vector<1x128xf32>
    %76 = vector.broadcast %75 : vector<1x128xf32> to vector<8x128xf32>
    %77 = arith.addf %74, %76 : vector<8x128xf32>
    %78 = tpu.iota {dimensions = array<i32: 1>} : vector<8x128xi32>
    %c2_i32 = arith.constant 2 : i32
    %79 = vector.broadcast %c2_i32 : i32 to vector<8x128xi32>
    %80 = arith.cmpi slt, %78, %79 : vector<8x128xi32>
    %cst_22 = arith.constant -1.000000e+30 : f32
    %81 = vector.broadcast %cst_22 : f32 to vector<8x128xf32>
    %82 = arith.select %80, %77, %81 : vector<8x128xi1>, vector<8x128xf32>
    %cst_23 = arith.constant dense<0xFF800000> : vector<8xf32>
    %83 = vector.multi_reduction <maximumf>, %82, %cst_23 [1] : vector<8x128xf32> to vector<8xf32>
    %84 = vector.shape_cast %83 : vector<8xf32> to vector<8x1xf32>
    %85 = vector.broadcast %84 : vector<8x1xf32> to vector<8x128xf32>
    %86 = arith.subf %82, %85 : vector<8x128xf32>
    %87 = math.exp %86 : vector<8x128xf32>
    %cst_24 = arith.constant dense<0.000000e+00> : vector<8xf32>
    %88 = vector.multi_reduction <add>, %87, %cst_24 [1] : vector<8x128xf32> to vector<8xf32>
    %89 = vector.shape_cast %88 : vector<8xf32> to vector<8x1xf32>
    %90 = math.log %89 : vector<8x1xf32>
    %91 = vector.broadcast %90 : vector<8x1xf32> to vector<8x128xf32>
    %92 = arith.subf %86, %91 : vector<8x128xf32>
    %cst_25 = arith.constant 0.000000e+00 : f32
    %93 = vector.broadcast %cst_25 : f32 to vector<8x128xf32>
    %94 = arith.select %80, %92, %93 : vector<8x128xi1>, vector<8x128xf32>
    %c0_26 = arith.constant 0 : index
    %c0_27 = arith.constant 0 : index
    %95 = vector.load %arg9[%c0_26, %c0_27] : memref<8x128xf32, #tpu.memory_space<vmem>>, vector<8x128xf32>
    tpu.vector_store %arg9[%c0_26, %c0_27], %94 {strides = array<i32>} : memref<8x128xf32, #tpu.memory_space<vmem>>, vector<8x128xf32>,
    return
  }
  func.func @transform_0(%arg0: i32) -> (i32, i32) {
    %c0_i32 = arith.constant 0 : i32
    %c0_i32_0 = arith.constant 0 : i32
    return %arg0, %c0_i32 : i32, i32
  }
  func.func @transform_1(%arg0: i32) -> (i32, i32) {
    %c0_i32 = arith.constant 0 : i32
    %c0_i32_0 = arith.constant 0 : i32
    %c0_i32_1 = arith.constant 0 : i32
    return %c0_i32, %c0_i32_0 : i32, i32
  }
  func.func @transform_2(%arg0: i32) -> (i32, i32) {
    %c0_i32 = arith.constant 0 : i32
    %c0_i32_0 = arith.constant 0 : i32
    %c0_i32_1 = arith.constant 0 : i32
    return %c0_i32, %c0_i32_0 : i32, i32
  }
  func.func @transform_3(%arg0: i32) -> (i32, i32) {
    %c0_i32 = arith.constant 0 : i32
    %c0_i32_0 = arith.constant 0 : i32
    %c0_i32_1 = arith.constant 0 : i32
    return %c0_i32, %c0_i32_0 : i32, i32
  }
  func.func @transform_4(%arg0: i32) -> (i32, i32) {
    %c0_i32 = arith.constant 0 : i32
    %c0_i32_0 = arith.constant 0 : i32
    %c0_i32_1 = arith.constant 0 : i32
    return %c0_i32, %c0_i32_0 : i32, i32
  }
  func.func @transform_5(%arg0: i32) -> (i32, i32) {
    %c0_i32 = arith.constant 0 : i32
    %c0_i32_0 = arith.constant 0 : i32
    %c0_i32_1 = arith.constant 0 : i32
    return %c0_i32, %c0_i32_0 : i32, i32
  }
  func.func @transform_6(%arg0: i32) -> (i32, i32) {
    %c0_i32 = arith.constant 0 : i32
    %c0_i32_0 = arith.constant 0 : i32
    %c0_i32_1 = arith.constant 0 : i32
    return %c0_i32, %c0_i32_0 : i32, i32
  }
  func.func @transform_7(%arg0: i32) -> (i32, i32) {
    %c0_i32 = arith.constant 0 : i32
    %c0_i32_0 = arith.constant 0 : i32
    %c0_i32_1 = arith.constant 0 : i32
    return %c0_i32, %c0_i32_0 : i32, i32
  }
  func.func @transform_8(%arg0: i32) -> (i32, i32) {
    %c0_i32 = arith.constant 0 : i32
    %c0_i32_0 = arith.constant 0 : i32
    return %arg0, %c0_i32 : i32, i32
  }
}

module attributes {stable_mosaic.version = 11 : i64} {
  func.func @dan_kernel(%arg0: i32, %arg1: memref<8x8xi32, #tpu.memory_space<vmem>>, %arg2: memref<64x32xbf16, #tpu.memory_space<vmem>>, %arg3: memref<32x32xbf16, #tpu.memory_space<vmem>>, %arg4: memref<1x32xf32, #tpu.memory_space<vmem>>, %arg5: memref<32x32xbf16, #tpu.memory_space<vmem>>, %arg6: memref<1x32xf32, #tpu.memory_space<vmem>>, %arg7: memref<32x128xbf16, #tpu.memory_space<vmem>>, %arg8: memref<1x128xf32, #tpu.memory_space<vmem>>, %arg9: memref<8x128xf32, #tpu.memory_space<vmem>>) attributes {dimension_semantics = [#tpu.dimension_semantics<parallel>], iteration_bounds = array<i64: 1>, scalar_prefetch = 0 : i64, scratch_operands = 0 : i64, tpu.core_type = #tpu.core_type<tc>, window_params = [{transform_indices = @transform_0, window_bounds = array<i64: 8, 8>}, {pipeline_mode = #tpu.pipeline_mode<synchronous>, transform_indices = @transform_1, window_bounds = array<i64: 64, 32>}, {pipeline_mode = #tpu.pipeline_mode<synchronous>, transform_indices = @transform_2, window_bounds = array<i64: 32, 32>}, {pipeline_mode = #tpu.pipeline_mode<synchronous>, transform_indices = @transform_3, window_bounds = array<i64: 1, 32>}, {pipeline_mode = #tpu.pipeline_mode<synchronous>, transform_indices = @transform_4, window_bounds = array<i64: 32, 32>}, {pipeline_mode = #tpu.pipeline_mode<synchronous>, transform_indices = @transform_5, window_bounds = array<i64: 1, 32>}, {pipeline_mode = #tpu.pipeline_mode<synchronous>, transform_indices = @transform_6, window_bounds = array<i64: 32, 128>}, {pipeline_mode = #tpu.pipeline_mode<synchronous>, transform_indices = @transform_7, window_bounds = array<i64: 1, 128>}, {transform_indices = @transform_8, window_bounds = array<i64: 8, 128>}]} {
    %0 = tpu.iota {dimensions = array<i32: 1>} : vector<8x64xi32>
    %cst = arith.constant 0.000000e+00 : f32
    %1 = vector.broadcast %cst : f32 to vector<8x64xf32>
    %c0 = arith.constant 0 : index
    %c0_0 = arith.constant 0 : index
    %2 = vector.load %arg1[%c0, %c0_0] : memref<8x8xi32, #tpu.memory_space<vmem>>, vector<8x8xi32>
    %3 = vector.extract_strided_slice %2 {offsets = [0, 0], sizes = [8, 1], strides = [1, 1]} : vector<8x8xi32> to vector<8x1xi32>
    %4 = vector.broadcast %3 : vector<8x1xi32> to vector<8x64xi32>
    %5 = arith.cmpi eq, %4, %0 : vector<8x64xi32>
    %6 = arith.extui %5 : vector<8x64xi1> to vector<8x64xi32>
    %7 = arith.sitofp %6 : vector<8x64xi32> to vector<8x64xf32>
    %8 = arith.addf %1, %7 : vector<8x64xf32>
    %9 = vector.extract_strided_slice %2 {offsets = [0, 1], sizes = [8, 1], strides = [1, 1]} : vector<8x8xi32> to vector<8x1xi32>
    %10 = vector.broadcast %9 : vector<8x1xi32> to vector<8x64xi32>
    %11 = arith.cmpi eq, %10, %0 : vector<8x64xi32>
    %12 = arith.extui %11 : vector<8x64xi1> to vector<8x64xi32>
    %13 = arith.sitofp %12 : vector<8x64xi32> to vector<8x64xf32>
    %14 = arith.addf %8, %13 : vector<8x64xf32>
    %15 = vector.extract_strided_slice %2 {offsets = [0, 2], sizes = [8, 1], strides = [1, 1]} : vector<8x8xi32> to vector<8x1xi32>
    %16 = vector.broadcast %15 : vector<8x1xi32> to vector<8x64xi32>
    %17 = arith.cmpi eq, %16, %0 : vector<8x64xi32>
    %18 = arith.extui %17 : vector<8x64xi1> to vector<8x64xi32>
    %19 = arith.sitofp %18 : vector<8x64xi32> to vector<8x64xf32>
    %20 = arith.addf %14, %19 : vector<8x64xf32>
    %21 = vector.extract_strided_slice %2 {offsets = [0, 3], sizes = [8, 1], strides = [1, 1]} : vector<8x8xi32> to vector<8x1xi32>
    %22 = vector.broadcast %21 : vector<8x1xi32> to vector<8x64xi32>
    %23 = arith.cmpi eq, %22, %0 : vector<8x64xi32>
    %24 = arith.extui %23 : vector<8x64xi1> to vector<8x64xi32>
    %25 = arith.sitofp %24 : vector<8x64xi32> to vector<8x64xf32>
    %26 = arith.addf %20, %25 : vector<8x64xf32>
    %27 = vector.extract_strided_slice %2 {offsets = [0, 4], sizes = [8, 1], strides = [1, 1]} : vector<8x8xi32> to vector<8x1xi32>
    %28 = vector.broadcast %27 : vector<8x1xi32> to vector<8x64xi32>
    %29 = arith.cmpi eq, %28, %0 : vector<8x64xi32>
    %30 = arith.extui %29 : vector<8x64xi1> to vector<8x64xi32>
    %31 = arith.sitofp %30 : vector<8x64xi32> to vector<8x64xf32>
    %32 = arith.addf %26, %31 : vector<8x64xf32>
    %33 = vector.extract_strided_slice %2 {offsets = [0, 5], sizes = [8, 1], strides = [1, 1]} : vector<8x8xi32> to vector<8x1xi32>
    %34 = vector.broadcast %33 : vector<8x1xi32> to vector<8x64xi32>
    %35 = arith.cmpi eq, %34, %0 : vector<8x64xi32>
    %36 = arith.extui %35 : vector<8x64xi1> to vector<8x64xi32>
    %37 = arith.sitofp %36 : vector<8x64xi32> to vector<8x64xf32>
    %38 = arith.addf %32, %37 : vector<8x64xf32>
    %39 = vector.extract_strided_slice %2 {offsets = [0, 6], sizes = [8, 1], strides = [1, 1]} : vector<8x8xi32> to vector<8x1xi32>
    %40 = vector.broadcast %39 : vector<8x1xi32> to vector<8x64xi32>
    %41 = arith.cmpi eq, %40, %0 : vector<8x64xi32>
    %42 = arith.extui %41 : vector<8x64xi1> to vector<8x64xi32>
    %43 = arith.sitofp %42 : vector<8x64xi32> to vector<8x64xf32>
    %44 = arith.addf %38, %43 : vector<8x64xf32>
    %45 = vector.extract_strided_slice %2 {offsets = [0, 7], sizes = [8, 1], strides = [1, 1]} : vector<8x8xi32> to vector<8x1xi32>
    %46 = vector.broadcast %45 : vector<8x1xi32> to vector<8x64xi32>
    %47 = arith.cmpi eq, %46, %0 : vector<8x64xi32>
    %48 = arith.extui %47 : vector<8x64xi1> to vector<8x64xi32>
    %49 = arith.sitofp %48 : vector<8x64xi32> to vector<8x64xf32>
    %50 = arith.addf %44, %49 : vector<8x64xf32>
    %51 = arith.truncf %50 : vector<8x64xf32> to vector<8x64xbf16>
    %c0_1 = arith.constant 0 : index
    %c0_2 = arith.constant 0 : index
    %52 = vector.load %arg2[%c0_1, %c0_2] : memref<64x32xbf16, #tpu.memory_space<vmem>>, vector<64x32xbf16>
    %cst_3 = arith.constant dense<0.000000e+00> : vector<8x32xf32>
    %53 = tpu.matmul %51, %52, %cst_3 {dimension_numbers = #tpu.dot_dimension_numbers<[1], [0], [0], [1], [0, 0, 1, 1], [], []>} : vector<8x64xbf16>, vector<64x32xbf16>, vector<8x32xf32> -> vector<8x32xf32>
    %cst_4 = arith.constant 1.250000e-01 : f32
    %54 = vector.broadcast %cst_4 : f32 to vector<8x32xf32>
    %55 = arith.mulf %53, %54 : vector<8x32xf32>
    %56 = arith.truncf %55 : vector<8x32xf32> to vector<8x32xbf16>
    %c0_5 = arith.constant 0 : index
    %c0_6 = arith.constant 0 : index
    %57 = vector.load %arg3[%c0_5, %c0_6] : memref<32x32xbf16, #tpu.memory_space<vmem>>, vector<32x32xbf16>
    %cst_7 = arith.constant dense<0.000000e+00> : vector<8x32xf32>
    %58 = tpu.matmul %56, %57, %cst_7 {dimension_numbers = #tpu.dot_dimension_numbers<[1], [0], [0], [1], [0, 0, 1, 1], [], []>} : vector<8x32xbf16>, vector<32x32xbf16>, vector<8x32xf32> -> vector<8x32xf32>
    %c0_8 = arith.constant 0 : index
    %c0_9 = arith.constant 0 : index
    %59 = vector.load %arg4[%c0_8, %c0_9] : memref<1x32xf32, #tpu.memory_space<vmem>>, vector<1x32xf32>
    %60 = vector.broadcast %59 : vector<1x32xf32> to vector<8x32xf32>
    %61 = arith.addf %58, %60 : vector<8x32xf32>
    %cst_10 = arith.constant 0.000000e+00 : f32
    %62 = vector.broadcast %cst_10 : f32 to vector<8x32xf32>
    %63 = arith.maximumf %61, %62 : vector<8x32xf32>
    %64 = arith.truncf %63 : vector<8x32xf32> to vector<8x32xbf16>
    %c0_11 = arith.constant 0 : index
    %c0_12 = arith.constant 0 : index
    %65 = vector.load %arg5[%c0_11, %c0_12] : memref<32x32xbf16, #tpu.memory_space<vmem>>, vector<32x32xbf16>
    %cst_13 = arith.constant dense<0.000000e+00> : vector<8x32xf32>
    %66 = tpu.matmul %64, %65, %cst_13 {dimension_numbers = #tpu.dot_dimension_numbers<[1], [0], [0], [1], [0, 0, 1, 1], [], []>} : vector<8x32xbf16>, vector<32x32xbf16>, vector<8x32xf32> -> vector<8x32xf32>
    %c0_14 = arith.constant 0 : index
    %c0_15 = arith.constant 0 : index
    %67 = vector.load %arg6[%c0_14, %c0_15] : memref<1x32xf32, #tpu.memory_space<vmem>>, vector<1x32xf32>
    %68 = vector.broadcast %67 : vector<1x32xf32> to vector<8x32xf32>
    %69 = arith.addf %66, %68 : vector<8x32xf32>
    %cst_16 = arith.constant 0.000000e+00 : f32
    %70 = vector.broadcast %cst_16 : f32 to vector<8x32xf32>
    %71 = arith.maximumf %69, %70 : vector<8x32xf32>
    %72 = arith.truncf %71 : vector<8x32xf32> to vector<8x32xbf16>
    %c0_17 = arith.constant 0 : index
    %c0_18 = arith.constant 0 : index
    %73 = vector.load %arg7[%c0_17, %c0_18] : memref<32x128xbf16, #tpu.memory_space<vmem>>, vector<32x128xbf16>
    %cst_19 = arith.constant dense<0.000000e+00> : vector<8x128xf32>
    %74 = tpu.matmul %72, %73, %cst_19 {dimension_numbers = #tpu.dot_dimension_numbers<[1], [0], [0], [1], [0, 0, 1, 1], [], []>} : vector<8x32xbf16>, vector<32x128xbf16>, vector<8x128xf32> -> vector<8x128xf32>
    %c0_20 = arith.constant 0 : index
    %c0_21 = arith.constant 0 : index
    %75 = vector.load %arg8[%c0_20, %c0_21] : memref<1x128xf32, #tpu.memory_space<vmem>>, vector<1x128xf32>
    %76 = vector.broadcast %75 : vector<1x128xf32> to vector<8x128xf32>
    %77 = arith.addf %74, %76 : vector<8x128xf32>
    %78 = tpu.iota {dimensions = array<i32: 1>} : vector<8x128xi32>
    %c2_i32 = arith.constant 2 : i32
    %79 = vector.broadcast %c2_i32 : i32 to vector<8x128xi32>
    %80 = arith.cmpi slt, %78, %79 : vector<8x128xi32>
    %cst_22 = arith.constant -1.000000e+30 : f32
    %81 = vector.broadcast %cst_22 : f32 to vector<8x128xf32>
    %82 = arith.select %80, %77, %81 : vector<8x128xi1>, vector<8x128xf32>
    %cst_23 = arith.constant dense<0xFF800000> : vector<8xf32>
    %83 = vector.multi_reduction <maximumf>, %82, %cst_23 [1] : vector<8x128xf32> to vector<8xf32>
    %84 = vector.shape_cast %83 : vector<8xf32> to vector<8x1xf32>
    %85 = vector.broadcast %84 : vector<8x1xf32> to vector<8x128xf32>
    %86 = arith.subf %82, %85 : vector<8x128xf32>
    %87 = math.exp %86 : vector<8x128xf32>
    %cst_24 = arith.constant dense<0.000000e+00> : vector<8xf32>
    %88 = vector.multi_reduction <add>, %87, %cst_24 [1] : vector<8x128xf32> to vector<8xf32>
    %89 = vector.shape_cast %88 : vector<8xf32> to vector<8x1xf32>
    %90 = math.log %89 : vector<8x1xf32>
    %91 = vector.broadcast %90 : vector<8x1xf32> to vector<8x128xf32>
    %92 = arith.subf %86, %91 : vector<8x128xf32>
    %cst_25 = arith.constant 0.000000e+00 : f32
    %93 = vector.broadcast %cst_25 : f32 to vector<8x128xf32>
    %94 = arith.select %80, %92, %93 : vector<8x128xi1>, vector<8x128xf32>
    %c0_26 = arith.constant 0 : index
    %c0_27 = arith.constant 0 : index
    %95 = vector.load %arg9[%c0_26, %c0_27] : memref<8x128xf32, #tpu.memory_space<vmem>>, vector<8x128xf32>
    tpu.vector_store %arg9[%c0_26, %c0_27], %94 {strides = array<i32>} : memref<8x128xf32, #tpu.memory_space<vmem>>, vector<8x128xf32>,
    return
  }
  func.func @transform_0(%arg0: i32) -> (i32, i32) {
    %c0_i32 = arith.constant 0 : i32
    %c0_i32_0 = arith.constant 0 : i32
    return %arg0, %c0_i32 : i32, i32
  }
  func.func @transform_1(%arg0: i32) -> (i32, i32) {
    %c0_i32 = arith.constant 0 : i32
    %c0_i32_0 = arith.constant 0 : i32
    %c0_i32_1 = arith.constant 0 : i32
    return %c0_i32, %c0_i32_0 : i32, i32
  }
  func.func @transform_2(%arg0: i32) -> (i32, i32) {
    %c0_i32 = arith.constant 0 : i32
    %c0_i32_0 = arith.constant 0 : i32
    %c0_i32_1 = arith.constant 0 : i32
    return %c0_i32, %c0_i32_0 : i32, i32
  }
  func.func @transform_3(%arg0: i32) -> (i32, i32) {
    %c0_i32 = arith.constant 0 : i32
    %c0_i32_0 = arith.constant 0 : i32
    %c0_i32_1 = arith.constant 0 : i32
    return %c0_i32, %c0_i32_0 : i32, i32
  }
  func.func @transform_4(%arg0: i32) -> (i32, i32) {
    %c0_i32 = arith.constant 0 : i32
    %c0_i32_0 = arith.constant 0 : i32
    %c0_i32_1 = arith.constant 0 : i32
    return %c0_i32, %c0_i32_0 : i32, i32
  }
  func.func @transform_5(%arg0: i32) -> (i32, i32) {
    %c0_i32 = arith.constant 0 : i32
    %c0_i32_0 = arith.constant 0 : i32
    %c0_i32_1 = arith.constant 0 : i32
    return %c0_i32, %c0_i32_0 : i32, i32
  }
  func.func @transform_6(%arg0: i32) -> (i32, i32) {
    %c0_i32 = arith.constant 0 : i32
    %c0_i32_0 = arith.constant 0 : i32
    %c0_i32_1 = arith.constant 0 : i32
    return %c0_i32, %c0_i32_0 : i32, i32
  }
  func.func @transform_7(%arg0: i32) -> (i32, i32) {
    %c0_i32 = arith.constant 0 : i32
    %c0_i32_0 = arith.constant 0 : i32
    %c0_i32_1 = arith.constant 0 : i32
    return %c0_i32, %c0_i32_0 : i32, i32
  }
  func.func @transform_8(%arg0: i32) -> (i32, i32) {
    %c0_i32 = arith.constant 0 : i32
    %c0_i32_0 = arith.constant 0 : i32
    return %arg0, %c0_i32 : i32, i32
  }
}

</mosaic_0001>

<bundles_post_ra>
// kernel: tpu_custom_call.1
= control target key start
LH: loop header
LB: loop body
LE: loop exit
PB: predicated region body
PF: predicated region fallthrough
CT: control target
= control target key end

     0   :  { %13 = vsyncpa [#allocation3], 0  ;;  %s735_s0 = inlined_call_operand.hbm [shape: s32[8,8], index: 0, kind: input, shape index: {}]   ;;  %s736_s1 = inlined_call_operand.vmem [shape: bf16[64,32], index: 1, kind: input, shape index: {}]   ;;  %s737_s2 = inlined_call_operand.vmem [shape: bf16[32,32], index: 2, kind: input, shape index: {}]   ;;  %s738_s3 = inlined_call_operand.vmem [shape: f32[1,32], index: 3, kind: input, shape index: {}]   ;;  %s739_s4 = inlined_call_operand.vmem [shape: bf16[32,32], index: 4, kind: input, shape index: {}]   ;;  %s740_s5 = inlined_call_operand.vmem [shape: f32[1,32], index: 5, kind: input, shape index: {}]   ;;  %s741_s6 = inlined_call_operand.vmem [shape: bf16[32,128], index: 6, kind: input, shape index: {}]   ;;  %s742_s7 = inlined_call_operand.vmem [shape: f32[1,128], index: 7, kind: input, shape index: {}]   ;;  %s743_s8 = inlined_call_operand.hbm [shape: f32[8,128], index: 8, kind: output, shape index: {}]  }
   0x1   :  { %14 = vsyncpa [#allocation4], 0  ;;  %s571_s27 = smov [#allocation2]   ;;  %s523_s9 = scalar_lea.hbm %s735_s0, 128 }
   0x2   :  { %s21_s28 = sshll.u32 %s571_s27, 4  ;;  %p524_p0 = scmp.ne.s32.totalorder %s735_s0, %s523_s9  ;;  %s22_s28 = int_to_ptr.vmem [resolvable:$true] %s21_s28 }
   0x3   :  { %p527_p1 = scmp.lt.u32.totalorder %s523_s9, %s735_s0 }
   0x5   :  { %p529_p2 = pnand %p527_p1, %p524_p0 }
   0x7   :  { %532 = shalt.err (!%p529_p2)
}
   0x8   :  { %s533_s14 = scalar_lea.vmem %s22_s28, 128  ;;  %p538_p4 = scmp.lt.s32.totalorder %s22_s28, %s22_s28 }
   0x9   :  { %p534_p3 = scmp.ne.s32.totalorder %s22_s28, %s533_s14  ;;  %p539_p5 = scmp.lt.s32.totalorder %s533_s14, %s533_s14 }
   0xb   :  { %p540_p6 = por %p539_p5, %p538_p4 }
   0xd   :  { %p541_p7 = pnand %p540_p6, %p534_p3 }
   0xf   :  { %544 = shalt.err (!%p541_p7)
}
  0x10   :  { %24 = dma.hbm_to_vmem [thread:$0]  %s735_s0, 128, %s22_s28, [#allocation3]  }
  0x11   :  { %567 = dma.done.wait [#allocation3], 128  }
  0x12   :  { %568 = vsyncadd [#allocation3], 4294967168  ;;  %v572_v0 = vmov 2   ;;  %v573_v1 = vmov 0   ;;  %v574_v2 = vmov 0.0   ;;  %v45_v3 = vld [vmem:[#allocation2] sm:$0xff]  ;;  %v43_v15 = vlaneseq }
  0x13   :  { %502 = vset.pattern.permute.xlu1 %v572_v0  ;;  %500 = vset.pattern.permute.xlu0 %v573_v1  ;;  %v575_v4 = vmov 3   ;;  %v576_v5 = vmov 1   ;;  %v577_v6 = vmov 4   ;;  %v578_v7 = vmov 5   ;;  %v509_v8 = vld [vmem:[%s736_s1] sm:$0xff]   ;;  %v510_v9 = vld [vmem:[%s736_s1 + $0x8] sm:$0xff]  }
  0x14   :  { %452 = vmatprep.subr.bf16.mxu0 %v574_v2  ;;  %464 = vmatprep.subr.bf16.mxu1 %v574_v2  ;;  %v579_v10 = vmov 6   ;;  %v580_v11 = vmov 7   ;;  %v511_v12 = vld [vmem:[%s736_s1 + $0x10] sm:$0xff]   ;;  %v512_v13 = vld [vmem:[%s736_s1 + $0x18] sm:$0xff]   ;;  %vm581_vm0 = vmmov 0   ;;  %v513_v14 = vld [vmem:[%s737_s2] sm:$0xff]  }
  0x15   :  { %61 = vperm.xlu1 %502, %v45_v3   ;;  %47 = vperm.xlu0 %500, %v45_v3   ;;  %v666_v18 = vand.u32 127, %v43_v15  ;;  %vm135_vm9 = vcmask 523264   ;;  %v514_v41 = vld [vmem:[%s737_s2 + $0x8] sm:$0xff]   ;;  %vm204_vm10 = vcmask 261120   ;;  %v515_v46 = vld [vmem:[%s739_s4] sm:$0xff]  }
  0x16   :  { %453 = vmatpush3.bf16.msra.mxu0 %v509_v8  ;;  %460 = vmatprep.mubr.msk.bf16.mxu0 %vm581_vm0, %v574_v2  ;;  %v516_v49 = vld [vmem:[%s739_s4 + $0x8] sm:$0xff]   ;;  %v517_v50 = vld [vmem:[%s741_s6] sm:$0xff]  }
  0x17   :  { %454 = vmatprep.subr.bf16.mxu0 %v574_v2  ;;  %468 = vmatprep.mubr.msk.bf16.mxu1 %vm581_vm0, %v574_v2  ;;  %v426_v51 = vld [vmem:[%s738_s3] ss:$0 sm:$0xff]  ;;  %v518_v59 = vld [vmem:[%s741_s6 + $0x8] sm:$0xff]   ;;  %vm384_vm11 = vcmp.lt.s32.totalorder %v666_v18, 2 }
  0x18   :  { %465 = vmatpush3.bf16.msra.mxu1 %v513_v14  ;;  %v430_v60 = vld [vmem:[%s740_s5] ss:$0 sm:$0xff]  ;;  %s582_s5 = smov [#allocation5]  }
  0x19   :  { %503 = vset.pattern.permute.xlu1 %v575_v4  ;;  %501 = vset.pattern.permute.xlu0 %v576_v5  ;;  %v434_v4 = vld [vmem:[%s742_s7] ss:$0 sm:$0xff]  ;;  %s404_s6 = sshll.u32 %s582_s5, 4  ;;  %s405_s6 = int_to_ptr.vmem [resolvable:$true] %s404_s6 }
  0x1a   :  { %68 = vperm.xlu1 %503, %v45_v3   ;;  %54 = vperm.xlu0 %501, %v45_v3   ;;  %s545_s7 = scalar_lea.vmem %s405_s6, 128  ;;  %p550_p9 = scmp.lt.s32.totalorder %s405_s6, %s405_s6 }
  0x1b   :  { %455 = vmatpush3.bf16.msra.mxu0 %v510_v9  ;;  %466 = vmatprep.subr.bf16.mxu1 %v574_v2  ;;  %p546_p8 = scmp.ne.s32.totalorder %s405_s6, %s545_s7  ;;  %p551_p10 = scmp.lt.s32.totalorder %s545_s7, %s545_s7 }
  0x1c   :  { %456 = vmatprep.subr.bf16.mxu0 %v574_v2  ;;  %467 = vmatpush3.bf16.msra.mxu1 %v514_v41 }
  0x1d   :  { %472 = vmatprep.subr.bf16.mxu1 %v574_v2  ;;  %p552_p11 = por %p551_p10, %p550_p9 }
  0x1e   :  { %504 = vset.pattern.permute.xlu1 %v577_v6  ;;  %505 = vset.pattern.permute.xlu0 %v578_v7 }
  0x1f   :  { %75 = vperm.xlu1 %504, %v45_v3   ;;  %82 = vperm.xlu0 %505, %v45_v3   ;;  %p553_p12 = pnand %p552_p11, %p546_p8 }
  0x20   :  { %457 = vmatpush3.bf16.msra.mxu0 %v511_v12 }
  0x21   :  { %458 = vmatprep.subr.bf16.mxu0 %v574_v2 }
  0x23   :  { %506 = vset.pattern.permute.xlu1 %v579_v10  ;;  %508 = vset.pattern.permute.xlu0 %v580_v11 }
  0x24   :  { %89 = vperm.xlu1 %506, %v45_v3   ;;  %459 = vmatpush3.bf16.msra.mxu0 %v512_v13 }
  0x25   :  { %480 = vmatprep.subr.bf16.mxu0 %v574_v2 }
  0x28   :  { %507 = vset.pattern.permute.xlu1 %v580_v11 }
  0x29   :  { %96 = vperm.xlu1 %507, %v45_v3  }
  0x94   :  { %v62_v16 = vpop.permute.xlu1 %61  ;;  %v48_v17 = vpop.permute.xlu0 %47 }
  0x95   :  { %vm49_vm1 = vcmp.eq.s32.totalorder %v48_v17, %v666_v18  ;;  %vm63_vm2 = vcmp.eq.s32.totalorder %v62_v16, %v666_v18 }
  0x96   :  { %v413_v21 = vsel %vm49_vm1, 1.0, %v574_v2  ;;  %v415_v24 = vsel %vm63_vm2, 1.0, %v574_v2 }
  0x99   :  { %v69_v19 = vpop.permute.xlu1 %68  ;;  %v55_v20 = vpop.permute.xlu0 %54 }
  0x9a   :  { %vm56_vm3 = vcmp.eq.s32.totalorder %v55_v20, %v666_v18  ;;  %vm70_vm4 = vcmp.eq.s32.totalorder %v69_v19, %v666_v18 }
  0x9b   :  { %v414_v22 = vsel %vm56_vm3, 1.0, %v574_v2  ;;  %v416_v28 = vsel %vm70_vm4, 1.0, %v574_v2 }
  0x9c   :  { %v59_v23 = vadd.f32 %v414_v22, %v413_v21 }
  0x9e   :  { %v66_v25 = vadd.f32 %v415_v24, %v59_v23  ;;  %v76_v26 = vpop.permute.xlu1 %75  ;;  %v83_v27 = vpop.permute.xlu0 %82 }
  0x9f   :  { %vm77_vm5 = vcmp.eq.s32.totalorder %v76_v26, %v666_v18  ;;  %vm84_vm6 = vcmp.eq.s32.totalorder %v83_v27, %v666_v18 }
  0xa0   :  { %v73_v29 = vadd.f32 %v416_v28, %v66_v25  ;;  %v417_v30 = vsel %vm77_vm5, 1.0, %v574_v2  ;;  %v418_v32 = vsel %vm84_vm6, 1.0, %v574_v2 }
  0xa2   :  { %v80_v31 = vadd.f32 %v417_v30, %v73_v29 }
  0xa3   :  { %v90_v33 = vpop.permute.xlu1 %89 }
  0xa4   :  { %vm91_vm7 = vcmp.eq.s32.totalorder %v90_v33, %v666_v18  ;;  %v87_v34 = vadd.f32 %v418_v32, %v80_v31 }
  0xa5   :  { %v419_v35 = vsel %vm91_vm7, 1.0, %v574_v2 }
  0xa6   :  { %v94_v37 = vadd.f32 %v419_v35, %v87_v34 }
  0xa8   :  { %v97_v36 = vpop.permute.xlu1 %96 }
  0xa9   :  { %vm98_vm8 = vcmp.eq.s32.totalorder %v97_v36, %v666_v18 }
  0xaa   :  { %v420_v38 = vsel %vm98_vm8, 1.0, %v574_v2 }
  0xab   :  { %v101_v39 = vadd.f32 %v420_v38, %v94_v37 }
  0xad   :  { %v102_v40 = vpack.c.bf16 %v101_v39, %v101_v39 }
  0xaf   :  { %461 = vmatmul.mubr.msk.bf16.vlgmr.msra.gmra.mrb[0].mxu0 %vm135_vm9, %v102_v40 }
  0xb0   :  { %484 = vmatprep.mubr.msk.bf16.mxu0 %vm581_vm0, %v574_v2  ;;  %481 = vmatpush3.bf16.msra.mxu0 %v517_v50 }
  0xb1   :  { %482 = vmatprep.subr.bf16.mxu0 %v574_v2 }
  0xb4   :  { %483 = vmatpush3.bf16.msra.mxu0 %v518_v59 }
 0x182   :  { %v173_v42 = vpop.f32.mrb[0].mxu0 }
 0x183   :  { %v179_v43 = vmul.f32 0.125, %v173_v42  ;;  %v462_v44 = vpop.f32.mrb[1].mxu0 }
 0x184   :  { %v176_v45 = vpop.f32.mrb[2].mxu0 }
 0x185   :  { %v180_v47 = vpack.c.bf16 %v179_v43, %v179_v43  ;;  %v463_v48 = vpop.f32.mrb[3].mxu0 }
 0x187   :  { %469 = vmatmul.mubr.msk.bf16.vlgmr.msra.gmra.mrb[0].mxu1 %vm204_vm10, %v180_v47 }
 0x188   :  { %473 = vmatpush3.bf16.msra.mxu1 %v515_v46  ;;  %476 = vmatprep.mubr.msk.bf16.mxu1 %vm581_vm0, %v574_v2 }
 0x189   :  { %474 = vmatprep.subr.bf16.mxu1 %v574_v2 }
 0x18c   :  { %475 = vmatpush3.bf16.msra.mxu1 %v516_v49 }
 0x25a   :  { %v242_v52 = vpop.f32.mrb[0].mxu1 }
 0x25b   :  { %v243_v53 = vadd.f32 %v426_v51, %v242_v52  ;;  %v470_v54 = vpop.f32.mrb[1].mxu1 }
 0x25c   :  { %v245_v55 = vpop.f32.mrb[2].mxu1 }
 0x25d   :  { %v248_v56 = vmax.f32 %v243_v53, 0.0  ;;  %v471_v57 = vpop.f32.mrb[3].mxu1 }
 0x25f   :  { %v249_v58 = vpack.c.bf16 %v248_v56, %v248_v56 }
 0x261   :  { %477 = vmatmul.mubr.msk.bf16.vlgmr.msra.gmra.mrb[4].mxu1 %vm204_vm10, %v249_v58 }
 0x334   :  { %v310_v61 = vpop.f32.mrb[4].mxu1 }
 0x335   :  { %v311_v62 = vadd.f32 %v430_v60, %v310_v61  ;;  %v478_v63 = vpop.f32.mrb[5].mxu1 }
 0x336   :  { %v313_v0 = vpop.f32.mrb[6].mxu1 }
 0x337   :  { %v316_v1 = vmax.f32 %v311_v62, 0.0  ;;  %v479_v2 = vpop.f32.mrb[7].mxu1 }
 0x339   :  { %v317_v3 = vpack.c.bf16 %v316_v1, %v316_v1 }
 0x33b   :  { %485 = vmatmul.mubr.msk.bf16.vlgmr.msra.gmra.mrb[4].mxu0 %vm204_vm10, %v317_v3 }
 0x40e   :  { %v378_v5 = vpop.f32.mrb[4].mxu0 }
 0x40f   :  { %v379_v6 = vadd.f32 %v434_v4, %v378_v5  ;;  %v486_v7 = vpop.f32.mrb[5].mxu0 }
 0x410   :  { %v381_v8 = vpop.f32.mrb[6].mxu0 }
 0x411   :  { %v487_v9 = vpop.f32.mrb[7].mxu0  ;;  %v385_v10 = vsel %vm384_vm11, %v379_v6, -1e+30 }
 0x412   :  { %386 = vmax.xlane.f32.xlu0 %v385_v10 }
 0x49f   :  { %v387_v11 = vpop.xlane.xlu0 %386 }
 0x4a0   :  { %v388_v12 = vsub.f32 %v385_v10, %v387_v11 }
 0x4a2   :  { %v389_v13 = vmul.f32 1.442695, %v388_v12 }
 0x4a4   :  { %519 = vpow2.f32 %v389_v13 }
 0x4ae   :  { %v520_v14 = vpop.eup %519 }
 0x4af   :  { %391 = vadd.xlane.f32.xlu1 %v520_v14 }
 0x53c   :  { %v392_v15 = vpop.xlane.xlu1 %391 }
 0x53d   :  { %521 = vlog2.f32 %v392_v15 }
 0x547   :  { %v522_v16 = vpop.eup %521 }
 0x548   :  { %v394_v17 = vmul.f32 0.6931472, %v522_v16 }
 0x54a   :  { %v395_v19 = vsub.f32 %v388_v12, %v394_v17 }
 0x54c   :  { %v396_v20 = vsel %vm384_vm11, %v395_v19, 0.0 }
 0x54d   :  { %397 = vst [vmem:[#allocation5] sm:$0xff] %v396_v20 }
 0x54e   :  { %556 = shalt.err (!%p553_p12)
}
 0x54f   :  { %s557_s17 = scalar_lea.hbm %s743_s8, 128 }
 0x550   :  { %p558_p13 = scmp.ne.s32.totalorder %s743_s8, %s557_s17  ;;  %p561_p0 = scmp.lt.u32.totalorder %s557_s17, %s743_s8 }
 0x552   :  { %p563_p1 = pnand %p561_p0, %p558_p13 }
 0x554   :  { %566 = shalt.err (!%p563_p1)
}
 0x555   :  { %407 = dma.vmem_to_hbm [thread:$0]  %s405_s6, 128, %s743_s8, [#allocation4]  }
 0x556   :  { %569 = dma.done.wait [#allocation4], 128  }
 0x557   :  { %570 = vsyncadd [#allocation4], 4294967168 }
 0x558   :  { %411 = vsyncpa [#allocation3], 1 }
 0x559   :  { %412 = vsyncpa [#allocation4], 1 }

// kernel: tpu_custom_call.1
= control target key start
LH: loop header
LB: loop body
LE: loop exit
PB: predicated region body
PF: predicated region fallthrough
CT: control target
= control target key end

     0   :  { %13 = vsyncpa [#allocation3], 0  ;;  %s735_s0 = inlined_call_operand.hbm [shape: s32[8,8], index: 0, kind: input, shape index: {}]   ;;  %s736_s1 = inlined_call_operand.vmem [shape: bf16[64,32], index: 1, kind: input, shape index: {}]   ;;  %s737_s2 = inlined_call_operand.vmem [shape: bf16[32,32], index: 2, kind: input, shape index: {}]   ;;  %s738_s3 = inlined_call_operand.vmem [shape: f32[1,32], index: 3, kind: input, shape index: {}]   ;;  %s739_s4 = inlined_call_operand.vmem [shape: bf16[32,32], index: 4, kind: input, shape index: {}]   ;;  %s740_s5 = inlined_call_operand.vmem [shape: f32[1,32], index: 5, kind: input, shape index: {}]   ;;  %s741_s6 = inlined_call_operand.vmem [shape: bf16[32,128], index: 6, kind: input, shape index: {}]   ;;  %s742_s7 = inlined_call_operand.vmem [shape: f32[1,128], index: 7, kind: input, shape index: {}]   ;;  %s743_s8 = inlined_call_operand.hbm [shape: f32[8,128], index: 8, kind: output, shape index: {}]  }
   0x1   :  { %14 = vsyncpa [#allocation4], 0  ;;  %s571_s27 = smov [#allocation2]   ;;  %s523_s9 = scalar_lea.hbm %s735_s0, 128 }
   0x2   :  { %s21_s28 = sshll.u32 %s571_s27, 4  ;;  %p524_p0 = scmp.ne.s32.totalorder %s735_s0, %s523_s9  ;;  %s22_s28 = int_to_ptr.vmem [resolvable:$true] %s21_s28 }
   0x3   :  { %p527_p1 = scmp.lt.u32.totalorder %s523_s9, %s735_s0 }
   0x5   :  { %p529_p2 = pnand %p527_p1, %p524_p0 }
   0x7   :  { %532 = shalt.err (!%p529_p2)
}
   0x8   :  { %s533_s14 = scalar_lea.vmem %s22_s28, 128  ;;  %p538_p4 = scmp.lt.s32.totalorder %s22_s28, %s22_s28 }
   0x9   :  { %p534_p3 = scmp.ne.s32.totalorder %s22_s28, %s533_s14  ;;  %p539_p5 = scmp.lt.s32.totalorder %s533_s14, %s533_s14 }
   0xb   :  { %p540_p6 = por %p539_p5, %p538_p4 }
   0xd   :  { %p541_p7 = pnand %p540_p6, %p534_p3 }
   0xf   :  { %544 = shalt.err (!%p541_p7)
}
  0x10   :  { %24 = dma.hbm_to_vmem [thread:$0]  %s735_s0, 128, %s22_s28, [#allocation3]  }
  0x11   :  { %567 = dma.done.wait [#allocation3], 128  }
  0x12   :  { %568 = vsyncadd [#allocation3], 4294967168  ;;  %v572_v0 = vmov 2   ;;  %v573_v1 = vmov 0   ;;  %v574_v2 = vmov 0.0   ;;  %v45_v3 = vld [vmem:[#allocation2] sm:$0xff]  ;;  %v43_v15 = vlaneseq }
  0x13   :  { %502 = vset.pattern.permute.xlu1 %v572_v0  ;;  %500 = vset.pattern.permute.xlu0 %v573_v1  ;;  %v575_v4 = vmov 3   ;;  %v576_v5 = vmov 1   ;;  %v577_v6 = vmov 4   ;;  %v578_v7 = vmov 5   ;;  %v509_v8 = vld [vmem:[%s736_s1] sm:$0xff]   ;;  %v510_v9 = vld [vmem:[%s736_s1 + $0x8] sm:$0xff]  }
  0x14   :  { %452 = vmatprep.subr.bf16.mxu0 %v574_v2  ;;  %464 = vmatprep.subr.bf16.mxu1 %v574_v2  ;;  %v579_v10 = vmov 6   ;;  %v580_v11 = vmov 7   ;;  %v511_v12 = vld [vmem:[%s736_s1 + $0x10] sm:$0xff]   ;;  %v512_v13 = vld [vmem:[%s736_s1 + $0x18] sm:$0xff]   ;;  %vm581_vm0 = vmmov 0   ;;  %v513_v14 = vld [vmem:[%s737_s2] sm:$0xff]  }
  0x15   :  { %61 = vperm.xlu1 %502, %v45_v3   ;;  %47 = vperm.xlu0 %500, %v45_v3   ;;  %v666_v18 = vand.u32 127, %v43_v15  ;;  %vm135_vm9 = vcmask 523264   ;;  %v514_v41 = vld [vmem:[%s737_s2 + $0x8] sm:$0xff]   ;;  %vm204_vm10 = vcmask 261120   ;;  %v515_v46 = vld [vmem:[%s739_s4] sm:$0xff]  }
  0x16   :  { %453 = vmatpush3.bf16.msra.mxu0 %v509_v8  ;;  %460 = vmatprep.mubr.msk.bf16.mxu0 %vm581_vm0, %v574_v2  ;;  %v516_v49 = vld [vmem:[%s739_s4 + $0x8] sm:$0xff]   ;;  %v517_v50 = vld [vmem:[%s741_s6] sm:$0xff]  }
  0x17   :  { %454 = vmatprep.subr.bf16.mxu0 %v574_v2  ;;  %468 = vmatprep.mubr.msk.bf16.mxu1 %vm581_vm0, %v574_v2  ;;  %v426_v51 = vld [vmem:[%s738_s3] ss:$0 sm:$0xff]  ;;  %v518_v59 = vld [vmem:[%s741_s6 + $0x8] sm:$0xff]   ;;  %vm384_vm11 = vcmp.lt.s32.totalorder %v666_v18, 2 }
  0x18   :  { %465 = vmatpush3.bf16.msra.mxu1 %v513_v14  ;;  %v430_v60 = vld [vmem:[%s740_s5] ss:$0 sm:$0xff]  ;;  %s582_s5 = smov [#allocation5]  }
  0x19   :  { %503 = vset.pattern.permute.xlu1 %v575_v4  ;;  %501 = vset.pattern.permute.xlu0 %v576_v5  ;;  %v434_v4 = vld [vmem:[%s742_s7] ss:$0 sm:$0xff]  ;;  %s404_s6 = sshll.u32 %s582_s5, 4  ;;  %s405_s6 = int_to_ptr.vmem [resolvable:$true] %s404_s6 }
  0x1a   :  { %68 = vperm.xlu1 %503, %v45_v3   ;;  %54 = vperm.xlu0 %501, %v45_v3   ;;  %s545_s7 = scalar_lea.vmem %s405_s6, 128  ;;  %p550_p9 = scmp.lt.s32.totalorder %s405_s6, %s405_s6 }
  0x1b   :  { %455 = vmatpush3.bf16.msra.mxu0 %v510_v9  ;;  %466 = vmatprep.subr.bf16.mxu1 %v574_v2  ;;  %p546_p8 = scmp.ne.s32.totalorder %s405_s6, %s545_s7  ;;  %p551_p10 = scmp.lt.s32.totalorder %s545_s7, %s545_s7 }
  0x1c   :  { %456 = vmatprep.subr.bf16.mxu0 %v574_v2  ;;  %467 = vmatpush3.bf16.msra.mxu1 %v514_v41 }
  0x1d   :  { %472 = vmatprep.subr.bf16.mxu1 %v574_v2  ;;  %p552_p11 = por %p551_p10, %p550_p9 }
  0x1e   :  { %504 = vset.pattern.permute.xlu1 %v577_v6  ;;  %505 = vset.pattern.permute.xlu0 %v578_v7 }
  0x1f   :  { %75 = vperm.xlu1 %504, %v45_v3   ;;  %82 = vperm.xlu0 %505, %v45_v3   ;;  %p553_p12 = pnand %p552_p11, %p546_p8 }
  0x20   :  { %457 = vmatpush3.bf16.msra.mxu0 %v511_v12 }
  0x21   :  { %458 = vmatprep.subr.bf16.mxu0 %v574_v2 }
  0x23   :  { %506 = vset.pattern.permute.xlu1 %v579_v10  ;;  %508 = vset.pattern.permute.xlu0 %v580_v11 }
  0x24   :  { %89 = vperm.xlu1 %506, %v45_v3   ;;  %459 = vmatpush3.bf16.msra.mxu0 %v512_v13 }
  0x25   :  { %480 = vmatprep.subr.bf16.mxu0 %v574_v2 }
  0x28   :  { %507 = vset.pattern.permute.xlu1 %v580_v11 }
  0x29   :  { %96 = vperm.xlu1 %507, %v45_v3  }
  0x94   :  { %v62_v16 = vpop.permute.xlu1 %61  ;;  %v48_v17 = vpop.permute.xlu0 %47 }
  0x95   :  { %vm49_vm1 = vcmp.eq.s32.totalorder %v48_v17, %v666_v18  ;;  %vm63_vm2 = vcmp.eq.s32.totalorder %v62_v16, %v666_v18 }
  0x96   :  { %v413_v21 = vsel %vm49_vm1, 1.0, %v574_v2  ;;  %v415_v24 = vsel %vm63_vm2, 1.0, %v574_v2 }
  0x99   :  { %v69_v19 = vpop.permute.xlu1 %68  ;;  %v55_v20 = vpop.permute.xlu0 %54 }
  0x9a   :  { %vm56_vm3 = vcmp.eq.s32.totalorder %v55_v20, %v666_v18  ;;  %vm70_vm4 = vcmp.eq.s32.totalorder %v69_v19, %v666_v18 }
  0x9b   :  { %v414_v22 = vsel %vm56_vm3, 1.0, %v574_v2  ;;  %v416_v28 = vsel %vm70_vm4, 1.0, %v574_v2 }
  0x9c   :  { %v59_v23 = vadd.f32 %v414_v22, %v413_v21 }
  0x9e   :  { %v66_v25 = vadd.f32 %v415_v24, %v59_v23  ;;  %v76_v26 = vpop.permute.xlu1 %75  ;;  %v83_v27 = vpop.permute.xlu0 %82 }
  0x9f   :  { %vm77_vm5 = vcmp.eq.s32.totalorder %v76_v26, %v666_v18  ;;  %vm84_vm6 = vcmp.eq.s32.totalorder %v83_v27, %v666_v18 }
  0xa0   :  { %v73_v29 = vadd.f32 %v416_v28, %v66_v25  ;;  %v417_v30 = vsel %vm77_vm5, 1.0, %v574_v2  ;;  %v418_v32 = vsel %vm84_vm6, 1.0, %v574_v2 }
  0xa2   :  { %v80_v31 = vadd.f32 %v417_v30, %v73_v29 }
  0xa3   :  { %v90_v33 = vpop.permute.xlu1 %89 }
  0xa4   :  { %vm91_vm7 = vcmp.eq.s32.totalorder %v90_v33, %v666_v18  ;;  %v87_v34 = vadd.f32 %v418_v32, %v80_v31 }
  0xa5   :  { %v419_v35 = vsel %vm91_vm7, 1.0, %v574_v2 }
  0xa6   :  { %v94_v37 = vadd.f32 %v419_v35, %v87_v34 }
  0xa8   :  { %v97_v36 = vpop.permute.xlu1 %96 }
  0xa9   :  { %vm98_vm8 = vcmp.eq.s32.totalorder %v97_v36, %v666_v18 }
  0xaa   :  { %v420_v38 = vsel %vm98_vm8, 1.0, %v574_v2 }
  0xab   :  { %v101_v39 = vadd.f32 %v420_v38, %v94_v37 }
  0xad   :  { %v102_v40 = vpack.c.bf16 %v101_v39, %v101_v39 }
  0xaf   :  { %461 = vmatmul.mubr.msk.bf16.vlgmr.msra.gmra.mrb[0].mxu0 %vm135_vm9, %v102_v40 }
  0xb0   :  { %484 = vmatprep.mubr.msk.bf16.mxu0 %vm581_vm0, %v574_v2  ;;  %481 = vmatpush3.bf16.msra.mxu0 %v517_v50 }
  0xb1   :  { %482 = vmatprep.subr.bf16.mxu0 %v574_v2 }
  0xb4   :  { %483 = vmatpush3.bf16.msra.mxu0 %v518_v59 }
 0x182   :  { %v173_v42 = vpop.f32.mrb[0].mxu0 }
 0x183   :  { %v179_v43 = vmul.f32 0.125, %v173_v42  ;;  %v462_v44 = vpop.f32.mrb[1].mxu0 }
 0x184   :  { %v176_v45 = vpop.f32.mrb[2].mxu0 }
 0x185   :  { %v180_v47 = vpack.c.bf16 %v179_v43, %v179_v43  ;;  %v463_v48 = vpop.f32.mrb[3].mxu0 }
 0x187   :  { %469 = vmatmul.mubr.msk.bf16.vlgmr.msra.gmra.mrb[0].mxu1 %vm204_vm10, %v180_v47 }
 0x188   :  { %473 = vmatpush3.bf16.msra.mxu1 %v515_v46  ;;  %476 = vmatprep.mubr.msk.bf16.mxu1 %vm581_vm0, %v574_v2 }
 0x189   :  { %474 = vmatprep.subr.bf16.mxu1 %v574_v2 }
 0x18c   :  { %475 = vmatpush3.bf16.msra.mxu1 %v516_v49 }
 0x25a   :  { %v242_v52 = vpop.f32.mrb[0].mxu1 }
 0x25b   :  { %v243_v53 = vadd.f32 %v426_v51, %v242_v52  ;;  %v470_v54 = vpop.f32.mrb[1].mxu1 }
 0x25c   :  { %v245_v55 = vpop.f32.mrb[2].mxu1 }
 0x25d   :  { %v248_v56 = vmax.f32 %v243_v53, 0.0  ;;  %v471_v57 = vpop.f32.mrb[3].mxu1 }
 0x25f   :  { %v249_v58 = vpack.c.bf16 %v248_v56, %v248_v56 }
 0x261   :  { %477 = vmatmul.mubr.msk.bf16.vlgmr.msra.gmra.mrb[4].mxu1 %vm204_vm10, %v249_v58 }
 0x334   :  { %v310_v61 = vpop.f32.mrb[4].mxu1 }
 0x335   :  { %v311_v62 = vadd.f32 %v430_v60, %v310_v61  ;;  %v478_v63 = vpop.f32.mrb[5].mxu1 }
 0x336   :  { %v313_v0 = vpop.f32.mrb[6].mxu1 }
 0x337   :  { %v316_v1 = vmax.f32 %v311_v62, 0.0  ;;  %v479_v2 = vpop.f32.mrb[7].mxu1 }
 0x339   :  { %v317_v3 = vpack.c.bf16 %v316_v1, %v316_v1 }
 0x33b   :  { %485 = vmatmul.mubr.msk.bf16.vlgmr.msra.gmra.mrb[4].mxu0 %vm204_vm10, %v317_v3 }
 0x40e   :  { %v378_v5 = vpop.f32.mrb[4].mxu0 }
 0x40f   :  { %v379_v6 = vadd.f32 %v434_v4, %v378_v5  ;;  %v486_v7 = vpop.f32.mrb[5].mxu0 }
 0x410   :  { %v381_v8 = vpop.f32.mrb[6].mxu0 }
 0x411   :  { %v487_v9 = vpop.f32.mrb[7].mxu0  ;;  %v385_v10 = vsel %vm384_vm11, %v379_v6, -1e+30 }
 0x412   :  { %386 = vmax.xlane.f32.xlu0 %v385_v10 }
 0x49f   :  { %v387_v11 = vpop.xlane.xlu0 %386 }
 0x4a0   :  { %v388_v12 = vsub.f32 %v385_v10, %v387_v11 }
 0x4a2   :  { %v389_v13 = vmul.f32 1.442695, %v388_v12 }
 0x4a4   :  { %519 = vpow2.f32 %v389_v13 }
 0x4ae   :  { %v520_v14 = vpop.eup %519 }
 0x4af   :  { %391 = vadd.xlane.f32.xlu1 %v520_v14 }
 0x53c   :  { %v392_v15 = vpop.xlane.xlu1 %391 }
 0x53d   :  { %521 = vlog2.f32 %v392_v15 }
 0x547   :  { %v522_v16 = vpop.eup %521 }
 0x548   :  { %v394_v17 = vmul.f32 0.6931472, %v522_v16 }
 0x54a   :  { %v395_v19 = vsub.f32 %v388_v12, %v394_v17 }
 0x54c   :  { %v396_v20 = vsel %vm384_vm11, %v395_v19, 0.0 }
 0x54d   :  { %397 = vst [vmem:[#allocation5] sm:$0xff] %v396_v20 }
 0x54e   :  { %556 = shalt.err (!%p553_p12)
}
 0x54f   :  { %s557_s17 = scalar_lea.hbm %s743_s8, 128 }
 0x550   :  { %p558_p13 = scmp.ne.s32.totalorder %s743_s8, %s557_s17  ;;  %p561_p0 = scmp.lt.u32.totalorder %s557_s17, %s743_s8 }
 0x552   :  { %p563_p1 = pnand %p561_p0, %p558_p13 }
 0x554   :  { %566 = shalt.err (!%p563_p1)
}
 0x555   :  { %407 = dma.vmem_to_hbm [thread:$0]  %s405_s6, 128, %s743_s8, [#allocation4]  }
 0x556   :  { %569 = dma.done.wait [#allocation4], 128  }
 0x557   :  { %570 = vsyncadd [#allocation4], 4294967168 }
 0x558   :  { %411 = vsyncpa [#allocation3], 1 }
 0x559   :  { %412 = vsyncpa [#allocation4], 1 }

</bundles_post_ra>
